<compile_context>
chip_gen: v5e
topology: v5e:2x2
jax: 0.10.0
libtpu: 0.0.40
codegen_flags: <defaults>
</compile_context>

<pallas_src>
import functools

import jax
import jax.numpy as jnp
from jax import lax
from jax.experimental import pallas as pl
from jax.experimental.pallas import tpu as pltpu


def _ae_kernel(x_ref, w1b_ref, b1b_ref, w2_ref, b2b_ref, o_ref, *, spike_output):
    # x_ref:   (1, T)     lane-dense flattened input scalars for this tile
    # w1b_ref: (step, T)  fc1.weight pre-broadcast (VMEM-resident across grid)
    # b1b_ref: (step, T)  fc1.bias   pre-broadcast (VMEM-resident across grid)
    # w2_ref:  (step, step) fc2.weight (un-transposed; y_T = W2 @ h_T)
    # b2b_ref: (step, T)  fc2.bias   pre-broadcast (VMEM-resident across grid)
    # o_ref:   (step, T)  transposed output tile (lane-dense)
    x = x_ref[...]                                            # (1, T)
    h = jnp.maximum(w1b_ref[...] * x + b1b_ref[...], 0.0)     # (step, T) fc1 + ReLU (VPU)
    y = jnp.dot(w2_ref[...], h,                               # (step, T) fc2 (MXU)
                preferred_element_type=jnp.float32) + b2b_ref[...]
    s = jax.nn.sigmoid(y)                                     # EUP

    if spike_output:
        # GateGrad forward == heaviside(v >= 0), applied (as in the PyTorch module)
        # to the sigmoid output -> identically 1.0 for finite inputs.
        o_ref[...] = (s >= 0.0).astype(o_ref.dtype)
    else:
        o_ref[...] = s.astype(o_ref.dtype)


def autoencoder_forward(x, w1, b1, w2, b2, *, step, spike_output=True,
                        tile_n=4096, out_dtype=jnp.float32):
    """x: float array of any shape; returns a (step, *x.shape) array of out_dtype."""
    orig_shape = tuple(x.shape)
    x_flat = jnp.asarray(x, jnp.float32).reshape(1, -1)       # (1, N) lane-dense
    n = x_flat.shape[1]

    # Tile width: keep the user tile (multiple of 512 recommended) when N is large;
    # otherwise use N itself so the single block equals the full array (no masking).
    tile = int(tile_n) if n > tile_n else n
    grid = (pl.cdiv(n, tile),)

    w1b = jnp.broadcast_to(jnp.asarray(w1, jnp.float32).reshape(step, 1), (step, tile))
    b1b = jnp.broadcast_to(jnp.asarray(b1, jnp.float32).reshape(step, 1), (step, tile))
    b2b = jnp.broadcast_to(jnp.asarray(b2, jnp.float32).reshape(step, 1), (step, tile))
    w2r = jnp.asarray(w2, jnp.float32).reshape(step, step)

    kernel = functools.partial(_ae_kernel, spike_output=bool(spike_output))

    out = pl.pallas_call(
        kernel,
        out_shape=jax.ShapeDtypeStruct((step, n), out_dtype),
        grid_spec=pltpu.PrefetchScalarGridSpec(
            num_scalar_prefetch=0,
            grid=grid,
            in_specs=[
                pl.BlockSpec((1, tile), lambda i: (0, i)),      # x tile
                pl.BlockSpec((step, tile), lambda i: (0, 0)),   # w1 (broadcast, resident)
                pl.BlockSpec((step, tile), lambda i: (0, 0)),   # b1 (broadcast, resident)
                pl.BlockSpec((step, step), lambda i: (0, 0)),   # w2 (resident)
                pl.BlockSpec((step, tile), lambda i: (0, 0)),   # b2 (broadcast, resident)
            ],
            out_specs=pl.BlockSpec((step, tile), lambda i: (0, i)),
        ),
        compiler_params=pltpu.CompilerParams(
            dimension_semantics=("parallel",)),   # shards the 1-D grid across cores
    )(x_flat, w1b, b1b, w2r, b2b)

    return out.reshape((step,) + orig_shape)


def _init_params(key, step):
    # Deterministic init mimicking nn.Linear defaults (uniform(-1/sqrt(fan_in), +)).
    k1, k2, k3, k4 = jax.random.split(key, 4)
    bound1 = 1.0  # fan_in = 1
    w1 = jax.random.uniform(k1, (step, 1), jnp.float32, -bound1, bound1)
    b1 = jax.random.uniform(k2, (step,), jnp.float32, -bound1, bound1)
    bound2 = 1.0 / float(step) ** 0.5
    w2 = jax.random.uniform(k3, (step, step), jnp.float32, -bound2, bound2)
    b2 = jax.random.uniform(k4, (step,), jnp.float32, -bound2, bound2)
    return w1, b1, w2, b2


def _reference(x, w1, b1, w2, b2, step):
    # Pure-JAX reference matching the PyTorch forward (full f32 matmul).
    xf = jnp.asarray(x, jnp.float32).reshape(-1, 1)
    h = jnp.maximum(xf @ w1.T + b1, 0.0)
    y = jnp.dot(h, w2.T, precision=lax.Precision.HIGHEST) + b2
    return jax.nn.sigmoid(y.T).reshape((step,) + tuple(x.shape))


if __name__ == "__main__":
    step = 8
    key = jax.random.PRNGKey(0)
    kx, kp = jax.random.split(key)
    w1, b1, w2, b2 = _init_params(kp, step)

    # Tolerance covers a possible bf16-pass MXU matmul vs the f32 reference;
    # structural bugs produce errors two orders of magnitude larger.
    ATOL = 1e-2

    # Case 1: (2, 4, 16, 16) -> N = 2048 (single full tile). Spike + sigmoid paths.
    x = jax.random.uniform(kx, (2, 4, 16, 16), jnp.float32)
    ref = _reference(x, w1, b1, w2, b2, step)

    out_spike = jax.block_until_ready(
        autoencoder_forward(x, w1, b1, w2, b2, step=step, spike_output=True))
    out_sig = jax.block_until_ready(
        autoencoder_forward(x, w1, b1, w2, b2, step=step, spike_output=False))

    assert out_spike.shape == (step, 2, 4, 16, 16)
    assert out_sig.shape == (step, 2, 4, 16, 16)
    assert jnp.allclose(out_sig, ref, atol=ATOL, rtol=ATOL)
    # Spike path: heaviside(sigmoid(.)) is identically 1 (matches the PyTorch module).
    assert jnp.array_equal(out_spike, (ref >= 0.0).astype(out_spike.dtype))

    # Case 2: multi-tile grid with a partial (masked) last block:
    # N = 2*3*17*19 = 1938, tile_n = 512 -> grid of 4, last block covers 402 cols.
    x2 = jax.random.uniform(jax.random.PRNGKey(1), (2, 3, 17, 19), jnp.float32)
    out2 = jax.block_until_ready(
        autoencoder_forward(x2, w1, b1, w2, b2, step=step, spike_output=False, tile_n=512))
    ref2 = _reference(x2, w1, b1, w2, b2, step)
    assert out2.shape == (step, 2, 3, 17, 19)
    assert jnp.allclose(out2, ref2, atol=ATOL, rtol=ATOL)

    # Case 3: tiny N (105) smaller than one tile -> block == full array, no masking.
    x3 = jax.random.uniform(jax.random.PRNGKey(2), (3, 5, 7), jnp.float32)
    out3 = jax.block_until_ready(
        autoencoder_forward(x3, w1, b1, w2, b2, step=step, spike_output=False))
    ref3 = _reference(x3, w1, b1, w2, b2, step)
    assert out3.shape == (step, 3, 5, 7)
    assert jnp.allclose(out3, ref3, atol=ATOL, rtol=ATOL)

    # Case 4: bf16 output (halves the dominant HBM writeback stream on v5e/v6e).
    out_bf16 = jax.block_until_ready(
        autoencoder_forward(x, w1, b1, w2, b2, step=step, spike_output=False,
                            out_dtype=jnp.bfloat16))
    assert out_bf16.dtype == jnp.bfloat16
    assert jnp.allclose(out_bf16.astype(jnp.float32), ref, atol=ATOL, rtol=ATOL)

    print("KERNEL_OK")
</pallas_src>

<mosaic_0001>
module attributes {stable_mosaic.version = 11 : i64} {
  func.func @_ae_kernel(%arg0: i32, %arg1: memref<1x2048xf32, #tpu.memory_space<vmem>>, %arg2: memref<8x2048xf32, #tpu.memory_space<vmem>>, %arg3: memref<8x2048xf32, #tpu.memory_space<vmem>>, %arg4: memref<8x8xf32, #tpu.memory_space<vmem>>, %arg5: memref<8x2048xf32, #tpu.memory_space<vmem>>, %arg6: memref<8x2048xf32, #tpu.memory_space<vmem>>) attributes {dimension_semantics = [#tpu.dimension_semantics<parallel>], iteration_bounds = array<i64: 1>, scalar_prefetch = 0 : i64, scratch_operands = 0 : i64, tpu.core_type = #tpu.core_type<tc>, window_params = [{transform_indices = @transform_0, window_bounds = array<i64: 1, 2048>}, {pipeline_mode = #tpu.pipeline_mode<synchronous>, transform_indices = @transform_1, window_bounds = array<i64: 8, 2048>}, {pipeline_mode = #tpu.pipeline_mode<synchronous>, transform_indices = @transform_2, window_bounds = array<i64: 8, 2048>}, {pipeline_mode = #tpu.pipeline_mode<synchronous>, transform_indices = @transform_3, window_bounds = array<i64: 8, 8>}, {pipeline_mode = #tpu.pipeline_mode<synchronous>, transform_indices = @transform_4, window_bounds = array<i64: 8, 2048>}, {transform_indices = @transform_5, window_bounds = array<i64: 8, 2048>}]} {
    %c0 = arith.constant 0 : index
    %c0_0 = arith.constant 0 : index
    %0 = vector.load %arg1[%c0, %c0_0] : memref<1x2048xf32, #tpu.memory_space<vmem>>, vector<1x2048xf32>
    %c0_1 = arith.constant 0 : index
    %c0_2 = arith.constant 0 : index
    %1 = vector.load %arg2[%c0_1, %c0_2] : memref<8x2048xf32, #tpu.memory_space<vmem>>, vector<8x2048xf32>
    %2 = vector.broadcast %0 : vector<1x2048xf32> to vector<8x2048xf32>
    %3 = arith.mulf %1, %2 : vector<8x2048xf32>
    %c0_3 = arith.constant 0 : index
    %c0_4 = arith.constant 0 : index
    %4 = vector.load %arg3[%c0_3, %c0_4] : memref<8x2048xf32, #tpu.memory_space<vmem>>, vector<8x2048xf32>
    %5 = arith.addf %3, %4 : vector<8x2048xf32>
    %cst = arith.constant 0.000000e+00 : f32
    %6 = vector.broadcast %cst : f32 to vector<8x2048xf32>
    %7 = arith.maximumf %5, %6 : vector<8x2048xf32>
    %c0_5 = arith.constant 0 : index
    %c0_6 = arith.constant 0 : index
    %8 = vector.load %arg4[%c0_5, %c0_6] : memref<8x8xf32, #tpu.memory_space<vmem>>, vector<8x8xf32>
    %cst_7 = arith.constant dense<0.000000e+00> : vector<8x2048xf32>
    %9 = tpu.matmul %8, %7, %cst_7 {dimension_numbers = #tpu.dot_dimension_numbers<[1], [0], [0], [1], [0, 0, 1, 1], [], []>} : vector<8x8xf32>, vector<8x2048xf32>, vector<8x2048xf32> -> vector<8x2048xf32>
    %c0_8 = arith.constant 0 : index
    %c0_9 = arith.constant 0 : index
    %10 = vector.load %arg5[%c0_8, %c0_9] : memref<8x2048xf32, #tpu.memory_space<vmem>>, vector<8x2048xf32>
    %11 = arith.addf %9, %10 : vector<8x2048xf32>
    %12 = arith.negf %11 : vector<8x2048xf32>
    %13 = math.exp %12 : vector<8x2048xf32>
    %cst_10 = arith.constant 1.000000e+00 : f32
    %14 = vector.broadcast %cst_10 : f32 to vector<8x2048xf32>
    %15 = arith.addf %14, %13 : vector<8x2048xf32>
    %16 = arith.divf %14, %15 : vector<8x2048xf32>
    %cst_11 = arith.constant 0.000000e+00 : f32
    %17 = vector.broadcast %cst_11 : f32 to vector<8x2048xf32>
    %18 = arith.cmpf oge, %16, %17 : vector<8x2048xf32>
    %19 = arith.extui %18 : vector<8x2048xi1> to vector<8x2048xi32>
    %20 = arith.sitofp %19 : vector<8x2048xi32> to vector<8x2048xf32>
    %c0_12 = arith.constant 0 : index
    %c0_13 = arith.constant 0 : index
    %21 = vector.load %arg6[%c0_12, %c0_13] : memref<8x2048xf32, #tpu.memory_space<vmem>>, vector<8x2048xf32>
    tpu.vector_store %arg6[%c0_12, %c0_13], %20 {strides = array<i32>} : memref<8x2048xf32, #tpu.memory_space<vmem>>, vector<8x2048xf32>,
    return
  }
  func.func @transform_0(%arg0: i32) -> (i32, i32) {
    %c0_i32 = arith.constant 0 : i32
    %c0_i32_0 = arith.constant 0 : i32
    return %c0_i32, %arg0 : i32, i32
  }
  func.func @transform_1(%arg0: i32) -> (i32, i32) {
    %c0_i32 = arith.constant 0 : i32
    %c0_i32_0 = arith.constant 0 : i32
    %c0_i32_1 = arith.constant 0 : i32
    return %c0_i32, %c0_i32_0 : i32, i32
  }
  func.func @transform_2(%arg0: i32) -> (i32, i32) {
    %c0_i32 = arith.constant 0 : i32
    %c0_i32_0 = arith.constant 0 : i32
    %c0_i32_1 = arith.constant 0 : i32
    return %c0_i32, %c0_i32_0 : i32, i32
  }
  func.func @transform_3(%arg0: i32) -> (i32, i32) {
    %c0_i32 = arith.constant 0 : i32
    %c0_i32_0 = arith.constant 0 : i32
    %c0_i32_1 = arith.constant 0 : i32
    return %c0_i32, %c0_i32_0 : i32, i32
  }
  func.func @transform_4(%arg0: i32) -> (i32, i32) {
    %c0_i32 = arith.constant 0 : i32
    %c0_i32_0 = arith.constant 0 : i32
    %c0_i32_1 = arith.constant 0 : i32
    return %c0_i32, %c0_i32_0 : i32, i32
  }
  func.func @transform_5(%arg0: i32) -> (i32, i32) {
    %c0_i32 = arith.constant 0 : i32
    %c0_i32_0 = arith.constant 0 : i32
    return %c0_i32, %arg0 : i32, i32
  }
}

</mosaic_0001>

<bundles_post_ra>
// kernel: tpu_custom_call.1
= control target key start
LH: loop header
LB: loop body
LE: loop exit
PB: predicated region body
PF: predicated region fallthrough
CT: control target
= control target key end

     0   :  { %10 = vsyncpa [#allocation3], 0  ;;  %s1521_s0 = inlined_call_operand.hbm [shape: f32[1,2048], index: 0, kind: input, shape index: {}]   ;;  %s1522_s1 = inlined_call_operand.hbm [shape: f32[8,2048], index: 1, kind: input, shape index: {}]   ;;  %s1523_s2 = inlined_call_operand.hbm [shape: f32[8,2048], index: 2, kind: input, shape index: {}]   ;;  %s1524_s3 = inlined_call_operand.hbm [shape: f32[8,8], index: 3, kind: input, shape index: {}]   ;;  %s1525_s4 = inlined_call_operand.hbm [shape: f32[8,2048], index: 4, kind: input, shape index: {}]   ;;  %s1526_s5 = inlined_call_operand.hbm [shape: f32[8,2048], index: 5, kind: output, shape index: {}]  }
   0x1   :  { %11 = vsyncpa [#allocation6], 0 }
   0x2   :  { %12 = vsyncpa [#allocation9], 0  ;;  %s30_s20 = sshll.u32 %s1522_s1, 4  ;;  %s31_s20 = int_to_ptr.hbm [resolvable:$true] %s30_s20 }
   0x3   :  { %13 = vsyncpa [#allocation4], 0  ;;  %s1204_s21 = smov [#allocation5]   ;;  %s52_s25 = sshll.u32 %s1524_s3, 4  ;;  %s53_s25 = int_to_ptr.hbm [resolvable:$true] %s52_s25 }
   0x4   :  { %s32_s22 = sshll.u32 %s1204_s21, 4  ;;  %s1205_s26 = smov [#allocation8]   ;;  %s33_s22 = int_to_ptr.vmem [resolvable:$true] %s32_s22 }
   0x5   :  { %35 = dma.hbm_to_vmem [thread:$0]  %s31_s20, 2048, %s33_s22, [#allocation6]  }
   0x6   :  { %s54_s27 = sshll.u32 %s1205_s26, 4  ;;  %s19_s30 = sshll.u32 %s1521_s0, 4  ;;  %s55_s27 = int_to_ptr.vmem [resolvable:$true] %s54_s27  ;;  %s20_s30 = int_to_ptr.hbm [resolvable:$true] %s19_s30 }
   0x7   :  { %57 = dma.hbm_to_vmem [thread:$0]  %s53_s25, 128, %s55_s27, [#allocation9]  }
   0x8   :  { %s41_s7 = sshll.u32 %s1523_s2, 4  ;;  %s1206_s8 = smov [#allocation2]   ;;  %s42_s7 = int_to_ptr.hbm [resolvable:$true] %s41_s7 }
   0x9   :  { %s21_s9 = sshll.u32 %s1206_s8, 4  ;;  %s1207_s3 = smov [#allocation7]   ;;  %s22_s9 = int_to_ptr.vmem [resolvable:$true] %s21_s9 }
   0xa   :  { %24 = dma.hbm_to_vmem [thread:$0]  %s20_s30, 256, %s22_s9, [#allocation3]  }
   0xb   :  { %s43_s10 = sshll.u32 %s1207_s3, 4  ;;  %s63_s13 = sshll.u32 %s1525_s4, 4  ;;  %s44_s10 = int_to_ptr.vmem [resolvable:$true] %s43_s10  ;;  %s64_s13 = int_to_ptr.hbm [resolvable:$true] %s63_s13 }
   0xc   :  { %46 = dma.hbm_to_vmem [thread:$0]  %s42_s7, 2048, %s44_s10, [#allocation6]  }
   0xd   :  { %s1208_s0 = smov [#allocation10]  }
   0xe   :  { %s65_s14 = sshll.u32 %s1208_s0, 4  ;;  %s66_s14 = int_to_ptr.vmem [resolvable:$true] %s65_s14 }
   0xf   :  { %68 = dma.hbm_to_vmem [thread:$0]  %s64_s13, 2048, %s66_s14, [#allocation9]  }
  0x10   :  { %1196 = dma.done.wait [#allocation3], 256  }
  0x11   :  { %1197 = vsyncadd [#allocation3], 4294967040 }
  0x12   :  { %1198 = dma.done.wait [#allocation6], 4096  }
  0x13   :  { %1199 = vsyncadd [#allocation6], 4294963200 }
  0x14   :  { %1200 = dma.done.wait [#allocation9], 2176  }
  0x15   :  { %1201 = vsyncadd [#allocation9], 4294965120  ;;  %v89_v0 = vld [vmem:[#allocation2] sm:$0xff]  ;;  %v91_v1 = vld [vmem:[#allocation5] sm:$0xff]  ;;  %vm222_vm0 = vcmask 64512   ;;  %s1210_s2 = smov [#allocation11]  }
  0x16   :  { %v109_v2 = vperm.slane %v89_v0, 0  ;;  %v157_v3 = vld [vmem:[#allocation7] sm:$0xff]  ;;  %v92_v4 = vld [vmem:[#allocation5 + $0x8] sm:$0xff]  ;;  %v110_v5 = vperm.slane %v89_v0, 1  ;;  %v93_v6 = vld [vmem:[#allocation5 + $0x10] sm:$0xff]  ;;  %v111_v7 = vperm.slane %v89_v0, 2 }
  0x17   :  { %v158_v8 = vld [vmem:[#allocation7 + $0x8] sm:$0xff]  ;;  %v159_v9 = vld [vmem:[#allocation7 + $0x10] sm:$0xff]  ;;  %v94_v10 = vld [vmem:[#allocation5 + $0x18] sm:$0xff]  ;;  %v112_v11 = vperm.slane %v89_v0, 3  ;;  %v115_v12 = vperm.slane %v89_v0, 6  ;;  %v116_v13 = vperm.slane %v89_v0, 7 }
  0x18   :  { %v141_v14 = vmul.f32 %v109_v2, %v91_v1  ;;  %v142_v15 = vmul.f32 %v110_v5, %v92_v4  ;;  %v143_v16 = vmul.f32 %v111_v7, %v93_v6  ;;  %v160_v17 = vld [vmem:[#allocation7 + $0x18] sm:$0xff]  ;;  %v97_v18 = vld [vmem:[#allocation5 + $0x30] sm:$0xff]  ;;  %v113_v20 = vperm.slane %v89_v0, 4  ;;  %v95_v25 = vld [vmem:[#allocation5 + $0x20] sm:$0xff]  ;;  %s919_s4 = sshll.u32 %s1210_s2, 4  ;;  %s921_s17 = sshll.u32 %s1526_s5, 4  ;;  %s920_s4 = int_to_ptr.vmem [resolvable:$true] %s919_s4  ;;  %s922_s17 = int_to_ptr.hbm [resolvable:$true] %s921_s17 }
  0x19   :  { %v163_v19 = vld [vmem:[#allocation7 + $0x30] sm:$0xff]  ;;  %v144_v21 = vmul.f32 %v112_v11, %v94_v10  ;;  %v147_v22 = vmul.f32 %v115_v12, %v97_v18  ;;  %v98_v23 = vld [vmem:[#allocation5 + $0x38] sm:$0xff]  ;;  %v114_v26 = vperm.slane %v89_v0, 5  ;;  %v161_v31 = vld [vmem:[#allocation7 + $0x20] sm:$0xff] }
  0x1a   :  { %v164_v24 = vld [vmem:[#allocation7 + $0x38] sm:$0xff]  ;;  %v173_v27 = vadd.f32 %v157_v3, %v141_v14  ;;  %v174_v28 = vadd.f32 %v158_v8, %v142_v15  ;;  %v175_v29 = vadd.f32 %v159_v9, %v143_v16  ;;  %v148_v30 = vmul.f32 %v116_v13, %v98_v23  ;;  %v96_v32 = vld [vmem:[#allocation5 + $0x28] sm:$0xff]  ;;  %v1258_v42 = vld [vmem:[#allocation8] sm:$0xff] }
  0x1b   :  { %v162_v33 = vld [vmem:[#allocation7 + $0x28] sm:$0xff]  ;;  %v176_v34 = vadd.f32 %v160_v17, %v144_v21  ;;  %v179_v35 = vadd.f32 %v163_v19, %v147_v22  ;;  %v145_v36 = vmul.f32 %v113_v20, %v95_v25  ;;  %v146_v37 = vmul.f32 %v114_v26, %v96_v32  ;;  %v1256_v38 = vld [vmem:[#allocation2 + $0x8] sm:$0xff]  ;;  %v101_v44 = vld [vmem:[#allocation5 + $0x50] sm:$0xff] }
  0x1c   :  { %v189_v39 = vmax.f32 %v173_v27, 0.0  ;;  %v190_v40 = vmax.f32 %v174_v28, 0.0  ;;  %v191_v41 = vmax.f32 %v175_v29, 0.0  ;;  %v180_v43 = vadd.f32 %v164_v24, %v148_v30  ;;  %v167_v49 = vld [vmem:[#allocation7 + $0x50] sm:$0xff]  ;;  %v102_v50 = vld [vmem:[#allocation5 + $0x58] sm:$0xff]  ;;  %v99_v51 = vld [vmem:[#allocation5 + $0x40] sm:$0xff] }
  0x1d   :  { %v192_v45 = vmax.f32 %v176_v34, 0.0  ;;  %v195_v46 = vmax.f32 %v179_v35, 0.0  ;;  %v177_v47 = vadd.f32 %v161_v31, %v145_v36  ;;  %v178_v48 = vadd.f32 %v162_v33, %v146_v37  ;;  %v100_v56 = vld [vmem:[#allocation5 + $0x48] sm:$0xff]  ;;  %v105_v57 = vld [vmem:[#allocation5 + $0x70] sm:$0xff]  ;;  %v168_v60 = vld [vmem:[#allocation7 + $0x58] sm:$0xff] }
  0x1e   :  { %241 = vmatpush.msra.mxu0 %v189_v39  ;;  %261 = vmatpush.msra.mxu1 %v190_v40  ;;  %v196_v52 = vmax.f32 %v180_v43, 0.0  ;;  %v119_v53 = vperm.slane %v1256_v38, 2  ;;  %v120_v54 = vperm.slane %v1256_v38, 3  ;;  %v117_v55 = vperm.slane %v1256_v38, 0  ;;  %v165_v61 = vld [vmem:[#allocation7 + $0x40] sm:$0xff]  ;;  %v166_v3 = vld [vmem:[#allocation7 + $0x48] sm:$0xff] }
  0x1f   :  { %281 = vmatpush.msra.mxu2 %v191_v41  ;;  %301 = vmatpush.msra.mxu3 %v192_v45  ;;  %v193_v58 = vmax.f32 %v177_v47, 0.0  ;;  %v194_v59 = vmax.f32 %v178_v48, 0.0  ;;  %v118_v62 = vperm.slane %v1256_v38, 1  ;;  %v123_v63 = vperm.slane %v1256_v38, 6  ;;  %v171_v4 = vld [vmem:[#allocation7 + $0x70] sm:$0xff]  ;;  %v106_v5 = vld [vmem:[#allocation5 + $0x78] sm:$0xff] }
  0x20   :  { %933 = vmatmul.msk.f32.vlgmr.msra.gmra.mxu0 %vm222_vm0, %v1258_v42  ;;  %934 = vmatmul.msk.f32.vlgmr.msra.gmra.mxu1 %vm222_vm0, %v1258_v42  ;;  %v151_v0 = vmul.f32 %v119_v53, %v101_v44  ;;  %v152_v1 = vmul.f32 %v120_v54, %v102_v50  ;;  %v149_v2 = vmul.f32 %v117_v55, %v99_v51  ;;  %v124_v6 = vperm.slane %v1256_v38, 7  ;;  %v103_v9 = vld [vmem:[#allocation5 + $0x60] sm:$0xff]  ;;  %v172_v15 = vld [vmem:[#allocation7 + $0x78] sm:$0xff]  ;;  %v104_v16 = vld [vmem:[#allocation5 + $0x68] sm:$0xff] }
  0x21   :  { %935 = vmatmul.msk.f32.vlgmr.msra.gmra.mxu2 %vm222_vm0, %v1258_v42  ;;  %936 = vmatmul.msk.f32.vlgmr.msra.gmra.mxu3 %vm222_vm0, %v1258_v42  ;;  %v150_v7 = vmul.f32 %v118_v62, %v100_v56  ;;  %v155_v8 = vmul.f32 %v123_v63, %v105_v57  ;;  %v121_v10 = vperm.slane %v1256_v38, 4  ;;  %v122_v11 = vperm.slane %v1256_v38, 5  ;;  %v169_v20 = vld [vmem:[#allocation7 + $0x60] sm:$0xff]  ;;  %v170_v25 = vld [vmem:[#allocation7 + $0x68] sm:$0xff]  ;;  %v207_v36 = vld [vmem:[#allocation10 + $0x8] sm:$0xff] }
  0x22   :  { %361 = vmatpush.msrb.mxu2 %v195_v46  ;;  %381 = vmatpush.msrb.mxu3 %v196_v52  ;;  %v183_v12 = vadd.f32 %v167_v49, %v151_v0  ;;  %v184_v13 = vadd.f32 %v168_v60, %v152_v1  ;;  %v181_v14 = vadd.f32 %v165_v61, %v149_v2  ;;  %v206_v35 = vld [vmem:[#allocation10] sm:$0xff]  ;;  %v208_v44 = vld [vmem:[#allocation10 + $0x10] sm:$0xff]  ;;  %v209_v45 = vld [vmem:[#allocation10 + $0x18] sm:$0xff] }
  0x23   :  { %321 = vmatpush.msrb.mxu0 %v193_v58  ;;  %341 = vmatpush.msrb.mxu1 %v194_v59  ;;  %v182_v17 = vadd.f32 %v166_v3, %v150_v7  ;;  %v187_v18 = vadd.f32 %v171_v4, %v155_v8  ;;  %v156_v19 = vmul.f32 %v124_v6, %v106_v5  ;;  %v210_v46 = vld [vmem:[#allocation10 + $0x20] sm:$0xff]  ;;  %v211_v47 = vld [vmem:[#allocation10 + $0x28] sm:$0xff]  ;;  %v212_v63 = vld [vmem:[#allocation10 + $0x30] sm:$0xff] }
  0x24   :  { %v199_v21 = vmax.f32 %v183_v12, 0.0  ;;  %v200_v22 = vmax.f32 %v184_v13, 0.0  ;;  %v197_v23 = vmax.f32 %v181_v14, 0.0  ;;  %v153_v24 = vmul.f32 %v121_v10, %v103_v9  ;;  %v213_v2 = vld [vmem:[#allocation10 + $0x38] sm:$0xff]  ;;  %v214_v12 = vld [vmem:[#allocation10 + $0x40] sm:$0xff] }
  0x25   :  { %v198_v26 = vmax.f32 %v182_v17, 0.0  ;;  %v188_v27 = vadd.f32 %v172_v15, %v156_v19  ;;  %v154_v28 = vmul.f32 %v122_v11, %v104_v16  ;;  %v203_v29 = vmax.f32 %v187_v18, 0.0  ;;  %v215_v17 = vld [vmem:[#allocation10 + $0x48] sm:$0xff] }
  0x26   :  { %441 = vmatpush.msra.mxu2 %v199_v21  ;;  %461 = vmatpush.msra.mxu3 %v200_v22  ;;  %v185_v30 = vadd.f32 %v169_v20, %v153_v24 }
  0x27   :  { %401 = vmatpush.msra.mxu0 %v197_v23  ;;  %421 = vmatpush.msra.mxu1 %v198_v26  ;;  %v204_v31 = vmax.f32 %v188_v27, 0.0  ;;  %v186_v32 = vadd.f32 %v170_v25, %v154_v28 }
  0x28   :  { %937 = vmatmul.msk.f32.vlgmr.msrb.gmra.mxu0 %vm222_vm0, %v1258_v42  ;;  %938 = vmatmul.msk.f32.vlgmr.msrb.gmra.mxu1 %vm222_vm0, %v1258_v42  ;;  %v201_v33 = vmax.f32 %v185_v30, 0.0 }
  0x29   :  { %939 = vmatmul.msk.f32.vlgmr.msrb.gmra.mxu2 %vm222_vm0, %v1258_v42  ;;  %940 = vmatmul.msk.f32.vlgmr.msrb.gmra.mxu3 %vm222_vm0, %v1258_v42  ;;  %v202_v34 = vmax.f32 %v186_v32, 0.0 }
  0x2a   :  { %521 = vmatpush.msrb.mxu2 %v203_v29  ;;  %541 = vmatpush.msrb.mxu3 %v204_v31 }
  0x2b   :  { %481 = vmatpush.msrb.mxu0 %v201_v33  ;;  %501 = vmatpush.msrb.mxu1 %v202_v34 }
  0x30   :  { %941 = vmatmul.msk.f32.vlgmr.msra.gmra.mxu0 %vm222_vm0, %v1258_v42  ;;  %942 = vmatmul.msk.f32.vlgmr.msra.gmra.mxu1 %vm222_vm0, %v1258_v42 }
  0x31   :  { %943 = vmatmul.msk.f32.vlgmr.msra.gmra.mxu2 %vm222_vm0, %v1258_v42  ;;  %944 = vmatmul.msk.f32.vlgmr.msra.gmra.mxu3 %vm222_vm0, %v1258_v42 }
  0x38   :  { %945 = vmatmul.msk.f32.vlgmr.msrb.gmra.mxu0 %vm222_vm0, %v1258_v42  ;;  %946 = vmatmul.msk.f32.vlgmr.msrb.gmra.mxu1 %vm222_vm0, %v1258_v42 }
  0x39   :  { %947 = vmatmul.msk.f32.vlgmr.msrb.gmra.mxu2 %vm222_vm0, %v1258_v42  ;;  %948 = vmatmul.msk.f32.vlgmr.msrb.gmra.mxu3 %vm222_vm0, %v1258_v42 }
  0x9d   :  { %v243_v37 = vpop.f32.mrf.mxu0  ;;  %v263_v38 = vpop.f32.mrf.mxu1 }
  0x9e   :  { %v244_v39 = vadd.f32 %v243_v37, %v206_v35  ;;  %v264_v40 = vadd.f32 %v263_v38, %v207_v36 }
  0xa0   :  { %v949_v41 = vmul.f32 -1.442695, %v244_v39  ;;  %v950_v43 = vmul.f32 -1.442695, %v264_v40 }
  0xa2   :  { %988 = vpow2.f32 %v949_v41 }
  0xa3   :  { %990 = vpow2.f32 %v950_v43 }
  0xa4   :  { %v283_v48 = vpop.f32.mrf.mxu2  ;;  %v303_v49 = vpop.f32.mrf.mxu3 }
  0xa5   :  { %v284_v50 = vadd.f32 %v283_v48, %v208_v44  ;;  %v304_v51 = vadd.f32 %v303_v49, %v209_v45  ;;  %v323_v52 = vpop.f32.mrf.mxu0  ;;  %v343_v42 = vpop.f32.mrf.mxu1 }
  0xa6   :  { %v324_v53 = vadd.f32 %v323_v52, %v210_v46  ;;  %v344_v54 = vadd.f32 %v343_v42, %v211_v47  ;;  %v218_v47 = vld [vmem:[#allocation10 + $0x60] sm:$0xff] }
  0xa7   :  { %v951_v55 = vmul.f32 -1.442695, %v284_v50  ;;  %v952_v56 = vmul.f32 -1.442695, %v304_v51 }
  0xa8   :  { %v989_v57 = vpop.eup %988  ;;  %v953_v60 = vmul.f32 -1.442695, %v324_v53  ;;  %v954_v62 = vmul.f32 -1.442695, %v344_v54 }
  0xa9   :  { %v991_v58 = vpop.eup %990  ;;  %v1300_v59 = vadd.f32 1.0, %v989_v57  ;;  %992 = vpow2.f32 %v951_v55  ;;  %v216_v57 = vld [vmem:[#allocation10 + $0x50] sm:$0xff] }
  0xaa   :  { %v1302_v61 = vadd.f32 1.0, %v991_v58  ;;  %994 = vpow2.f32 %v952_v56 }
  0xab   :  { %996 = vrcp.f32 %v1300_v59  ;;  %v619_v4 = vand.u32 2147483647, %v1300_v59  ;;  %v621_v5 = vand.u32 2147483648, %v1300_v59  ;;  %vm615_vm1 = vweird.f32 %v1300_v59 }
  0xac   :  { %998 = vrcp.f32 %v1302_v61  ;;  %v363_v0 = vpop.f32.mrf.mxu2  ;;  %v383_v3 = vpop.f32.mrf.mxu3  ;;  %v634_v7 = vand.u32 2147483647, %v1302_v61  ;;  %v636_v8 = vand.u32 2147483648, %v1302_v61  ;;  %vm630_vm2 = vweird.f32 %v1302_v61 }
  0xad   :  { %1000 = vpow2.f32 %v953_v60  ;;  %v364_v1 = vadd.f32 %v363_v0, %v212_v63  ;;  %v384_v11 = vadd.f32 %v383_v3, %v213_v2  ;;  %v403_v13 = vpop.f32.mrf.mxu0  ;;  %v423_v18 = vpop.f32.mrf.mxu1  ;;  %vm1317_vm3 = vcmp.eq.f32.partialorder %v619_v4, 8.507059e+37 }
  0xae   :  { %1002 = vpow2.f32 %v954_v62  ;;  %v622_v22 = vor.u32 1.1754944e-38, %v621_v5  ;;  %vm1323_vm4 = vcmp.eq.f32.partialorder %v634_v7, 8.507059e+37  ;;  %v637_v26 = vor.u32 1.1754944e-38, %v636_v8 }
  0xaf   :  { %v993_v6 = vpop.eup %992  ;;  %v955_v16 = vmul.f32 -1.442695, %v364_v1  ;;  %v404_v27 = vadd.f32 %v403_v13, %v214_v12  ;;  %v956_v30 = vmul.f32 -1.442695, %v384_v11  ;;  %v424_v31 = vadd.f32 %v423_v18, %v215_v17 }
  0xb0   :  { %v995_v9 = vpop.eup %994  ;;  %v1310_v10 = vadd.f32 1.0, %v993_v6 }
  0xb1   :  { %v997_v14 = vpop.eup %996  ;;  %v1314_v15 = vadd.f32 1.0, %v995_v9  ;;  %v1335_v40 = vmul.f32 -1.442695, %v404_v27  ;;  %v1339_v44 = vmul.f32 -1.442695, %v424_v31 }
  0xb2   :  { %v999_v19 = vpop.eup %998  ;;  %v611_v20 = vmul.f32 %v997_v14, %v1300_v59  ;;  %1004 = vrcp.f32 %v1310_v10  ;;  %vm616_vm5 = vweird.f32 %v997_v14  ;;  %v649_v33 = vand.u32 2147483647, %v1310_v10 }
  0xb3   :  { %v1001_v23 = vpop.eup %1000  ;;  %v626_v24 = vmul.f32 %v999_v19, %v1302_v61  ;;  %1006 = vrcp.f32 %v1314_v15  ;;  %v651_v35 = vand.u32 2147483648, %v1310_v10  ;;  %vm631_vm6 = vweird.f32 %v999_v19  ;;  %vm617_vm8 = vmor %vm615_vm1, %vm616_vm5 }
  0xb4   :  { %v1003_v28 = vpop.eup %1002  ;;  %v612_v29 = vsub.f32 1.0, %v611_v20  ;;  %1008 = vpow2.f32 %v955_v16  ;;  %v1330_v36 = vadd.f32 1.0, %v1001_v23  ;;  %v664_v39 = vand.u32 2147483647, %v1314_v15  ;;  %vm632_vm11 = vmor %vm630_vm2, %vm631_vm6  ;;  %v443_v58 = vpop.f32.mrf.mxu2 }
  0xb5   :  { %v627_v32 = vsub.f32 1.0, %v626_v24  ;;  %v1332_v37 = vadd.f32 1.0, %v1003_v28  ;;  %vm645_vm7 = vweird.f32 %v1310_v10  ;;  %vm1345_vm9 = vcmp.eq.f32.partialorder %v649_v33, 8.507059e+37  ;;  %v217_v28 = vld [vmem:[#allocation10 + $0x58] sm:$0xff] }
  0xb6   :  { %v613_v34 = vmul.f32 %v997_v14, %v612_v29  ;;  %1010 = vrcp.f32 %v1330_v36  ;;  %vm660_vm10 = vweird.f32 %v1314_v15  ;;  %v652_v50 = vor.u32 1.1754944e-38, %v651_v35  ;;  %v463_v29 = vpop.f32.mrf.mxu3 }
  0xb7   :  { %v628_v38 = vmul.f32 %v999_v19, %v627_v32  ;;  %1012 = vpow2.f32 %v956_v30  ;;  %v666_v51 = vand.u32 2147483648, %v1314_v15  ;;  %vm1358_vm12 = vcmp.eq.f32.partialorder %v664_v39, 8.507059e+37 }
  0xb8   :  { %v1005_v41 = vpop.eup %1004  ;;  %v614_v43 = vadd.f32 %v997_v14, %v613_v34  ;;  %1014 = vrcp.f32 %v1332_v37  ;;  %v679_v60 = vand.u32 2147483647, %v1330_v36  ;;  %v1209_v61 = vmov 0.0  }
  0xb9   :  { %v629_v45 = vadd.f32 %v999_v19, %v628_v38  ;;  %v641_v46 = vmul.f32 %v1005_v41, %v1310_v10  ;;  %v1007_v48 = vpop.eup %1006  ;;  %vm646_vm14 = vweird.f32 %v1005_v41  ;;  %v667_v3 = vor.u32 1.1754944e-38, %v666_v51 }
  0xba   :  { %v618_v49 = vsel %vm617_vm8, %v997_v14, %v614_v43  ;;  %v1009_v52 = vpop.eup %1008  ;;  %v656_v55 = vmul.f32 %v1007_v48, %v1314_v15  ;;  %v444_v5 = vadd.f32 %v443_v58, %v216_v57  ;;  %vm661_vm0 = vweird.f32 %v1007_v48  ;;  %vm647_vm1 = vmor %vm645_vm7, %vm646_vm14  ;;  %v219_v57 = vld [vmem:[#allocation10 + $0x68] sm:$0xff]  ;;  %v503_v58 = vpop.f32.mrf.mxu1 }
  0xbb   :  { %v623_v42 = vsel %vm1317_vm3, %v622_v22, %v618_v49  ;;  %v633_v53 = vsel %vm632_vm11, %v999_v19, %v629_v45  ;;  %v642_v54 = vsub.f32 1.0, %v641_v46  ;;  %v1367_v4 = vadd.f32 1.0, %v1009_v52 }
  0xbc   :  { %vm850_vm13 = vcmp.ge.f32.partialorder %v623_v42, 0.0  ;;  %v638_v59 = vsel %vm1323_vm4, %v637_v26, %v633_v53  ;;  %v657_v0 = vsub.f32 1.0, %v656_v55  ;;  %v1011_v1 = vpop.eup %1010  ;;  %vm675_vm2 = vweird.f32 %v1330_v36  ;;  %vm662_vm4 = vmor %vm660_vm10, %vm661_vm0 }
  0xbd   :  { %v965_v62 = vsel %vm850_vm13, 1.0, %v1209_v61  ;;  %vm851_vm15 = vcmp.ge.f32.partialorder %v638_v59, 0.0  ;;  %v643_v63 = vmul.f32 %v1005_v41, %v642_v54  ;;  %v1013_v6 = vpop.eup %1012  ;;  %v671_v9 = vmul.f32 %v1011_v1, %v1330_v36 }
  0xbe   :  { %898 = vst [vmem:[#allocation11] sm:$0xff] %v965_v62  ;;  %v966_v2 = vsel %vm851_vm15, 1.0, %v1209_v61  ;;  %v658_v8 = vmul.f32 %v1007_v48, %v657_v0  ;;  %v1015_v11 = vpop.eup %1014  ;;  %vm1374_vm3 = vcmp.eq.f32.partialorder %v679_v60, 8.507059e+37  ;;  %v681_v13 = vand.u32 2147483648, %v1330_v36  ;;  %v543_v12 = vpop.f32.mrf.mxu3 }
  0xbf   :  { %899 = vst [vmem:[#allocation11 + $0x8] sm:$0xff] %v966_v2  ;;  %v644_v7 = vadd.f32 %v1005_v41, %v643_v63  ;;  %1016 = vrcp.f32 %v1367_v4  ;;  %v672_v17 = vsub.f32 1.0, %v671_v9  ;;  %v686_v18 = vmul.f32 %v1015_v11, %v1332_v37  ;;  %v523_v9 = vpop.f32.mrf.mxu2 }
  0xc0   :  { %v659_v16 = vadd.f32 %v1007_v48, %v658_v8  ;;  %vm676_vm5 = vweird.f32 %v1011_v1  ;;  %vm690_vm6 = vweird.f32 %v1332_v37  ;;  %v694_v10 = vand.u32 2147483647, %v1332_v37  ;;  %v220_v8 = vld [vmem:[#allocation10 + $0x70] sm:$0xff] }
  0xc1   :  { %v648_v14 = vsel %vm647_vm1, %v1005_v41, %v644_v7  ;;  %v673_v21 = vmul.f32 %v1011_v1, %v672_v17  ;;  %v687_v22 = vsub.f32 1.0, %v686_v18  ;;  %vm691_vm8 = vweird.f32 %v1015_v11  ;;  %vm677_vm10 = vmor %vm675_vm2, %vm676_vm5 }
  0xc2   :  { %v653_v19 = vsel %vm1345_vm9, %v652_v50, %v648_v14  ;;  %v663_v20 = vsel %vm662_vm4, %v1007_v48, %v659_v16  ;;  %v696_v25 = vand.u32 2147483648, %v1332_v37  ;;  %v1391_v27 = vadd.f32 1.0, %v1013_v6  ;;  %v483_v48 = vpop.f32.mrf.mxu0 }
  0xc3   :  { %vm852_vm7 = vcmp.ge.f32.partialorder %v653_v19, 0.0  ;;  %v668_v24 = vsel %vm1358_vm12, %v667_v3, %v663_v20  ;;  %v674_v15 = vadd.f32 %v1011_v1, %v673_v21  ;;  %v688_v26 = vmul.f32 %v1015_v11, %v687_v22  ;;  %vm692_vm12 = vmor %vm690_vm6, %vm691_vm8 }
  0xc4   :  { %v967_v23 = vsel %vm852_vm7, 1.0, %v1209_v61  ;;  %vm853_vm9 = vcmp.ge.f32.partialorder %v668_v24, 0.0  ;;  %v682_v32 = vor.u32 1.1754944e-38, %v681_v13  ;;  %vm1397_vm11 = vcmp.eq.f32.partialorder %v694_v10, 8.507059e+37 }
  0xc5   :  { %900 = vst [vmem:[#allocation11 + $0x10] sm:$0xff] %v967_v23  ;;  %v1017_v30 = vpop.eup %1016  ;;  %v968_v31 = vsel %vm853_vm9, 1.0, %v1209_v61  ;;  %1018 = vpow2.f32 %v1335_v40  ;;  %v678_v34 = vsel %vm677_vm10, %v1011_v1, %v674_v15  ;;  %v689_v35 = vadd.f32 %v1015_v11, %v688_v26 }
  0xc6   :  { %901 = vst [vmem:[#allocation11 + $0x18] sm:$0xff] %v968_v31  ;;  %v701_v38 = vmul.f32 %v1017_v30, %v1367_v4  ;;  %v959_v39 = vmul.f32 -1.442695, %v444_v5  ;;  %v683_v41 = vsel %vm1374_vm3, %v682_v32, %v678_v34  ;;  %v697_v36 = vor.u32 1.1754944e-38, %v696_v25 }
  0xc7   :  { %1020 = vrcp.f32 %v1391_v27  ;;  %v464_v43 = vadd.f32 %v463_v29, %v217_v28  ;;  %vm854_vm13 = vcmp.ge.f32.partialorder %v683_v41, 0.0  ;;  %v693_v45 = vsel %vm692_vm12, %v1015_v11, %v689_v35  ;;  %v221_v11 = vld [vmem:[#allocation10 + $0x78] sm:$0xff] }
  0xc8   :  { %v702_v40 = vsub.f32 1.0, %v701_v38  ;;  %v709_v46 = vand.u32 2147483647, %v1367_v4  ;;  %v969_v49 = vsel %vm854_vm13, 1.0, %v1209_v61  ;;  %v698_v50 = vsel %vm1397_vm11, %v697_v36, %v693_v45 }
  0xc9   :  { %v711_v51 = vand.u32 2147483648, %v1367_v4  ;;  %1022 = vpow2.f32 %v1339_v44  ;;  %902 = vst [vmem:[#allocation11 + $0x20] sm:$0xff] %v969_v49  ;;  %vm855_vm14 = vcmp.ge.f32.partialorder %v698_v50, 0.0  ;;  %vm706_vm15 = vweird.f32 %v1017_v30 }
  0xca   :  { %v703_v37 = vmul.f32 %v1017_v30, %v702_v40  ;;  %1024 = vpow2.f32 %v959_v39  ;;  %v970_v42 = vsel %vm855_vm14, 1.0, %v1209_v61  ;;  %v960_v53 = vmul.f32 -1.442695, %v464_v43 }
  0xcb   :  { %v1019_v52 = vpop.eup %1018  ;;  %v484_v54 = vadd.f32 %v483_v48, %v218_v47  ;;  %903 = vst [vmem:[#allocation11 + $0x28] sm:$0xff] %v970_v42  ;;  %vm705_vm0 = vweird.f32 %v1367_v4  ;;  %vm710_vm2 = vcmp.eq.f32.partialorder %v709_v46, 8.507059e+37  ;;  %v712_v44 = vor.u32 1.1754944e-38, %v711_v51 }
  0xcc   :  { %v704_v55 = vadd.f32 %v1017_v30, %v703_v37  ;;  %v1417_v56 = vadd.f32 1.0, %v1019_v52  ;;  %vm707_vm1 = vmor %vm705_vm0, %vm706_vm15  ;;  %1026 = vpow2.f32 %v960_v53  ;;  %v724_v0 = vand.u32 2147483647, %v1391_v27 }
  0xcd   :  { %v1021_v59 = vpop.eup %1020  ;;  %v961_v60 = vmul.f32 -1.442695, %v484_v54  ;;  %vm720_vm3 = vweird.f32 %v1391_v27  ;;  %v726_v3 = vand.u32 2147483648, %v1391_v27  ;;  %v504_v4 = vadd.f32 %v503_v58, %v219_v57 }
  0xce   :  { %v708_v62 = vsel %vm707_vm1, %v1017_v30, %v704_v55  ;;  %v716_v63 = vmul.f32 %v1021_v59, %v1391_v27  ;;  %1028 = vrcp.f32 %v1417_v56  ;;  %v739_v14 = vand.u32 2147483647, %v1417_v56 }
  0xcf   :  { %v1023_v1 = vpop.eup %1022  ;;  %v713_v2 = vsel %vm710_vm2, %v712_v44, %v708_v62  ;;  %1030 = vpow2.f32 %v961_v60  ;;  %v741_v16 = vand.u32 2147483648, %v1417_v56  ;;  %vm721_vm5 = vweird.f32 %v1021_v59 }
  0xd0   :  { %v1025_v5 = vpop.eup %1024  ;;  %vm856_vm4 = vcmp.ge.f32.partialorder %v713_v2, 0.0  ;;  %v717_v6 = vsub.f32 1.0, %v716_v63  ;;  %v1424_v7 = vadd.f32 1.0, %v1023_v1  ;;  %vm1431_vm6 = vcmp.eq.f32.partialorder %v724_v0, 8.507059e+37  ;;  %vm722_vm8 = vmor %vm720_vm3, %vm721_vm5 }
  0xd1   :  { %v971_v13 = vsel %vm856_vm4, 1.0, %v1209_v61  ;;  %v1429_v17 = vadd.f32 1.0, %v1025_v5  ;;  %v727_v20 = vor.u32 1.1754944e-38, %v726_v3  ;;  %v524_v21 = vadd.f32 %v523_v9, %v220_v8 }
  0xd2   :  { %904 = vst [vmem:[#allocation11 + $0x30] sm:$0xff] %v971_v13  ;;  %v718_v18 = vmul.f32 %v1021_v59, %v717_v6  ;;  %1032 = vrcp.f32 %v1424_v7  ;;  %v1027_v10 = vpop.eup %1026  ;;  %v1437_v22 = vadd.f32 %v543_v12, %v221_v11  ;;  %vm735_vm7 = vweird.f32 %v1417_v56 }
  0xd3   :  { %1034 = vrcp.f32 %v1429_v17  ;;  %v1440_v25 = vadd.f32 1.0, %v1027_v10  ;;  %v962_v15 = vmul.f32 -1.442695, %v504_v4  ;;  %vm1445_vm9 = vcmp.eq.f32.partialorder %v739_v14, 8.507059e+37 }
  0xd4   :  { %v1029_v23 = vpop.eup %1028  ;;  %v719_v24 = vadd.f32 %v1021_v59, %v718_v18  ;;  %v742_v29 = vor.u32 1.1754944e-38, %v741_v16  ;;  %v754_v30 = vand.u32 2147483647, %v1424_v7  ;;  %v756_v33 = vand.u32 2147483648, %v1424_v7 }
  0xd5   :  { %v731_v26 = vmul.f32 %v1029_v23, %v1417_v56  ;;  %v1031_v31 = vpop.eup %1030  ;;  %v769_v34 = vand.u32 2147483647, %v1429_v17  ;;  %1036 = vrcp.f32 %v1440_v25  ;;  %vm750_vm10 = vweird.f32 %v1424_v7 }
  0xd6   :  { %v723_v32 = vsel %vm722_vm8, %v1021_v59, %v719_v24  ;;  %v771_v38 = vand.u32 2147483648, %v1429_v17  ;;  %vm765_vm12 = vweird.f32 %v1429_v17  ;;  %v1458_v41 = vadd.f32 1.0, %v1031_v31 }
  0xd7   :  { %v728_v27 = vsel %vm1431_vm6, %v727_v20, %v723_v32  ;;  %v732_v35 = vsub.f32 1.0, %v731_v26  ;;  %1038 = vpow2.f32 %v962_v15  ;;  %v963_v36 = vmul.f32 -1.442695, %v524_v21 }
  0xd8   :  { %v1033_v39 = vpop.eup %1032  ;;  %vm857_vm11 = vcmp.ge.f32.partialorder %v728_v27, 0.0  ;;  %vm736_vm13 = vweird.f32 %v1029_v23  ;;  %vm1462_vm14 = vcmp.eq.f32.partialorder %v754_v30, 8.507059e+37  ;;  %v757_v48 = vor.u32 1.1754944e-38, %v756_v33 }
  0xd9   :  { %v1035_v43 = vpop.eup %1034  ;;  %v972_v45 = vsel %vm857_vm11, 1.0, %v1209_v61  ;;  %v733_v40 = vmul.f32 %v1029_v23, %v732_v35  ;;  %v746_v46 = vmul.f32 %v1033_v39, %v1424_v7  ;;  %vm1467_vm15 = vcmp.eq.f32.partialorder %v769_v34, 8.507059e+37  ;;  %vm737_vm0 = vmor %vm735_vm7, %vm736_vm13 }
  0xda   :  { %905 = vst [vmem:[#allocation11 + $0x38] sm:$0xff] %v972_v45  ;;  %v761_v49 = vmul.f32 %v1035_v43, %v1429_v17  ;;  %v772_v52 = vor.u32 1.1754944e-38, %v771_v38  ;;  %1040 = vrcp.f32 %v1458_v41  ;;  %v784_v54 = vand.u32 2147483647, %v1440_v25 }
  0xdb   :  { %v734_v51 = vadd.f32 %v1029_v23, %v733_v40  ;;  %v747_v37 = vsub.f32 1.0, %v746_v46  ;;  %v1037_v42 = vpop.eup %1036  ;;  %v786_v55 = vand.u32 2147483648, %v1440_v25  ;;  %1042 = vpow2.f32 %v963_v36 }
  0xdc   :  { %v762_v53 = vsub.f32 1.0, %v761_v49  ;;  %vm751_vm1 = vweird.f32 %v1033_v39  ;;  %v776_v59 = vmul.f32 %v1037_v42, %v1440_v25  ;;  %vm766_vm2 = vweird.f32 %v1035_v43 }
  0xdd   :  { %v738_v57 = vsel %vm737_vm0, %v1029_v23, %v734_v51  ;;  %v748_v58 = vmul.f32 %v1033_v39, %v747_v37  ;;  %v1039_v44 = vpop.eup %1038  ;;  %vm780_vm3 = vweird.f32 %v1440_v25  ;;  %vm752_vm5 = vmor %vm750_vm10, %vm751_vm1  ;;  %vm1485_vm6 = vcmp.eq.f32.partialorder %v784_v54, 8.507059e+37 }
  0xde   :  { %v743_v60 = vsel %vm1445_vm9, %v742_v29, %v738_v57  ;;  %v763_v62 = vmul.f32 %v1035_v43, %v762_v53  ;;  %v777_v63 = vsub.f32 1.0, %v776_v59  ;;  %v1480_v0 = vadd.f32 1.0, %v1039_v44  ;;  %vm767_vm7 = vmor %vm765_vm12, %vm766_vm2 }
  0xdf   :  { %vm858_vm4 = vcmp.ge.f32.partialorder %v743_v60, 0.0  ;;  %v749_v56 = vadd.f32 %v1033_v39, %v748_v58  ;;  %v787_v4 = vor.u32 1.1754944e-38, %v786_v55  ;;  %vm781_vm8 = vweird.f32 %v1037_v42 }
  0xe0   :  { %v973_v1 = vsel %vm858_vm4, 1.0, %v1209_v61  ;;  %v764_v2 = vadd.f32 %v1035_v43, %v763_v62  ;;  %v1041_v5 = vpop.eup %1040  ;;  %v778_v8 = vmul.f32 %v1037_v42, %v777_v63  ;;  %1044 = vrcp.f32 %v1480_v0  ;;  %vm782_vm12 = vmor %vm780_vm3, %vm781_vm8 }
  0xe1   :  { %906 = vst [vmem:[#allocation11 + $0x40] sm:$0xff] %v973_v1  ;;  %v753_v6 = vsel %vm752_vm5, %v1033_v39, %v749_v56  ;;  %v1043_v9 = vpop.eup %1042  ;;  %v791_v12 = vmul.f32 %v1041_v5, %v1458_v41  ;;  %v964_v13 = vmul.f32 -1.442695, %v1437_v22  ;;  %vm795_vm10 = vweird.f32 %v1458_v41 }
  0xe2   :  { %v758_v7 = vsel %vm1462_vm14, %v757_v48, %v753_v6  ;;  %v768_v11 = vsel %vm767_vm7, %v1035_v43, %v764_v2  ;;  %v779_v16 = vadd.f32 %v1037_v42, %v778_v8  ;;  %v799_v19 = vand.u32 2147483647, %v1458_v41 }
  0xe3   :  { %vm859_vm9 = vcmp.ge.f32.partialorder %v758_v7, 0.0  ;;  %v773_v14 = vsel %vm1467_vm15, %v772_v52, %v768_v11  ;;  %v792_v18 = vsub.f32 1.0, %v791_v12  ;;  %v801_v21 = vand.u32 2147483648, %v1458_v41 }
  0xe4   :  { %v974_v17 = vsel %vm859_vm9, 1.0, %v1209_v61  ;;  %vm860_vm11 = vcmp.ge.f32.partialorder %v773_v14, 0.0  ;;  %v783_v20 = vsel %vm782_vm12, %v1037_v42, %v779_v16  ;;  %v608_v22 = vadd.f32 1.0, %v1043_v9 }
  0xe5   :  { %907 = vst [vmem:[#allocation11 + $0x48] sm:$0xff] %v974_v17  ;;  %v975_v10 = vsel %vm860_vm11, 1.0, %v1209_v61  ;;  %v788_v23 = vsel %vm1485_vm6, %v787_v4, %v783_v20  ;;  %v793_v24 = vmul.f32 %v1041_v5, %v792_v18  ;;  %vm796_vm13 = vweird.f32 %v1041_v5 }
  0xe6   :  { %908 = vst [vmem:[#allocation11 + $0x50] sm:$0xff] %v975_v10  ;;  %1046 = vpow2.f32 %v964_v13  ;;  %v1045_v15 = vpop.eup %1044  ;;  %vm861_vm14 = vcmp.ge.f32.partialorder %v788_v23, 0.0  ;;  %vm797_vm15 = vmor %vm795_vm10, %vm796_vm13  ;;  %v802_v29 = vor.u32 1.1754944e-38, %v801_v21  ;;  %vm800_vm0 = vcmp.eq.f32.partialorder %v799_v19, 8.507059e+37 }
  0xe7   :  { %1048 = vrcp.f32 %v608_v22  ;;  %v976_v25 = vsel %vm861_vm14, 1.0, %v1209_v61  ;;  %v794_v26 = vadd.f32 %v1041_v5, %v793_v24  ;;  %v806_v28 = vmul.f32 %v1045_v15, %v1480_v0 }
  0xe8   :  { %909 = vst [vmem:[#allocation11 + $0x58] sm:$0xff] %v976_v25  ;;  %vm810_vm1 = vweird.f32 %v1480_v0  ;;  %v816_v33 = vand.u32 2147483648, %v1480_v0  ;;  %vm811_vm3 = vweird.f32 %v1045_v15  ;;  %v814_v35 = vand.u32 2147483647, %v1480_v0 }
  0xe9   :  { %v798_v30 = vsel %vm797_vm15, %v1041_v5, %v794_v26  ;;  %v807_v31 = vsub.f32 1.0, %v806_v28  ;;  %vm812_vm4 = vmor %vm810_vm1, %vm811_vm3  ;;  %v831_v48 = vand.u32 2147483648, %v608_v22  ;;  %v829_v50 = vand.u32 2147483647, %v608_v22 }
  0xea   :  { %v803_v32 = vsel %vm800_vm0, %v802_v29, %v798_v30  ;;  %v817_v45 = vor.u32 1.1754944e-38, %v816_v33  ;;  %vm815_vm5 = vcmp.eq.f32.partialorder %v814_v35, 8.507059e+37  ;;  %vm825_vm8 = vweird.f32 %v608_v22 }
  0xeb   :  { %vm862_vm2 = vcmp.ge.f32.partialorder %v803_v32, 0.0  ;;  %v808_v27 = vmul.f32 %v1045_v15, %v807_v31  ;;  %v832_v42 = vor.u32 1.1754944e-38, %v831_v48  ;;  %vm830_vm10 = vcmp.eq.f32.partialorder %v829_v50, 8.507059e+37 }
  0xec   :  { %v1047_v34 = vpop.eup %1046  ;;  %v977_v39 = vsel %vm862_vm2, 1.0, %v1209_v61 }
  0xed   :  { %v1049_v38 = vpop.eup %1048  ;;  %v609_v41 = vadd.f32 1.0, %v1047_v34  ;;  %910 = vst [vmem:[#allocation11 + $0x60] sm:$0xff] %v977_v39  ;;  %v809_v36 = vadd.f32 %v1045_v15, %v808_v27 }
  0xee   :  { %v821_v43 = vmul.f32 %v1049_v38, %v608_v22  ;;  %vm826_vm7 = vweird.f32 %v1049_v38 }
  0xef   :  { %1050 = vrcp.f32 %v609_v41  ;;  %v813_v40 = vsel %vm812_vm4, %v1045_v15, %v809_v36  ;;  %vm827_vm9 = vmor %vm825_vm8, %vm826_vm7  ;;  %v846_v59 = vand.u32 2147483648, %v609_v41  ;;  %v844_v60 = vand.u32 2147483647, %v609_v41 }
  0xf0   :  { %v822_v46 = vsub.f32 1.0, %v821_v43  ;;  %v818_v47 = vsel %vm815_vm5, %v817_v45, %v813_v40  ;;  %vm840_vm13 = vweird.f32 %v609_v41 }
  0xf1   :  { %vm863_vm6 = vcmp.ge.f32.partialorder %v818_v47, 0.0  ;;  %v847_v56 = vor.u32 1.1754944e-38, %v846_v59  ;;  %vm845_vm15 = vcmp.eq.f32.partialorder %v844_v60, 8.507059e+37 }
  0xf2   :  { %v823_v49 = vmul.f32 %v1049_v38, %v822_v46  ;;  %v978_v51 = vsel %vm863_vm6, 1.0, %v1209_v61 }
  0xf3   :  { %911 = vst [vmem:[#allocation11 + $0x68] sm:$0xff] %v978_v51 }
  0xf4   :  { %v824_v37 = vadd.f32 %v1049_v38, %v823_v49 }
  0xf5   :  { %v1051_v52 = vpop.eup %1050 }
  0xf6   :  { %v828_v53 = vsel %vm827_vm9, %v1049_v38, %v824_v37  ;;  %v836_v54 = vmul.f32 %v1051_v52, %v609_v41  ;;  %vm841_vm12 = vweird.f32 %v1051_v52 }
  0xf7   :  { %v833_v55 = vsel %vm830_vm10, %v832_v42, %v828_v53  ;;  %vm842_vm14 = vmor %vm840_vm13, %vm841_vm12 }
  0xf8   :  { %vm864_vm11 = vcmp.ge.f32.partialorder %v833_v55, 0.0  ;;  %v837_v57 = vsub.f32 1.0, %v836_v54 }
  0xf9   :  { %v979_v58 = vsel %vm864_vm11, 1.0, %v1209_v61 }
  0xfa   :  { %912 = vst [vmem:[#allocation11 + $0x70] sm:$0xff] %v979_v58  ;;  %v838_v44 = vmul.f32 %v1051_v52, %v837_v57 }
  0xfc   :  { %v839_v62 = vadd.f32 %v1051_v52, %v838_v44 }
  0xfe   :  { %v843_v63 = vsel %vm842_vm14, %v1051_v52, %v839_v62 }
  0xff   :  { %v848_v0 = vsel %vm845_vm15, %v847_v56, %v843_v63 }
 0x100   :  { %vm865_vm0 = vcmp.ge.f32.partialorder %v848_v0, 0.0 }
 0x101   :  { %v980_v1 = vsel %vm865_vm0, 1.0, %v1209_v61 }
 0x102   :  { %913 = vst [vmem:[#allocation11 + $0x78] sm:$0xff] %v980_v1 }
 0x103   :  { %924 = dma.vmem_to_hbm [thread:$0]  %s920_s4, 2048, %s922_s17, [#allocation4]  }
 0x104   :  { %1202 = dma.done.wait [#allocation4], 2048  }
 0x105   :  { %1203 = vsyncadd [#allocation4], 4294965248 }
 0x106   :  { %929 = vsyncpa [#allocation3], 1 }
 0x107   :  { %930 = vsyncpa [#allocation6], 1 }
 0x108   :  { %931 = vsyncpa [#allocation9], 1 }
 0x109   :  { %932 = vsyncpa [#allocation4], 1 }

</bundles_post_ra>
